<compile_context>
chip_gen: v7x
topology: tpu7x:2x2x1
jax: 0.10.0
libtpu: 0.0.40
codegen_flags: <defaults>
</compile_context>

<pallas_src>
import jax
import jax.numpy as jnp
from jax.experimental import pallas as pl
from jax.experimental.pallas import tpu as pltpu

# Sobel taps (same values as the PyTorch module __init__) — used by the reference.
_SOB0 = ((1.0, 2.0, 1.0), (0.0, 0.0, 0.0), (-1.0, -2.0, -1.0))   # Gy kernel
_SOB1 = ((-1.0, 0.0, 1.0), (-2.0, 0.0, 2.0), (-1.0, 0.0, 1.0))   # Gx kernel


def _make_s_loss_kernel(H: int, W: int):
    Ho, Wo = H - 2, W - 2  # valid 3x3 conv output size

    def kernel(f_ref, m_ref, o_ref):
        # f_ref / m_ref: [1, 2, H, W] block for one batch element (VMEM).
        # Multiply in input dtype (matches reference), upcast for accumulation.
        x = (f_ref[0] * m_ref[0]).astype(jnp.float32)            # [2, H, W]

        def sobel_abs_sum(xc):
            # xc: [H, W], one channel. Separable form with hoisted shifted views.
            # Horizontal [1, 2, 1] smooth (valid along W): [H, Wo]
            h = xc[:, 0:Wo] + 2.0 * xc[:, 1:Wo + 1] + xc[:, 2:Wo + 2]
            # Gy[y, x] = h[y, x] - h[y + 2, x]                    -> [Ho, Wo]
            gy = h[0:Ho, :] - h[2:H, :]
            # Vertical [1, 2, 1] smooth (valid along H): [Ho, W]
            v = xc[0:Ho, :] + 2.0 * xc[1:Ho + 1, :] + xc[2:H, :]
            # Gx[y, x] = v[y, x + 2] - v[y, x]                    -> [Ho, Wo]
            gx = v[:, 2:W] - v[:, 0:Wo]
            return jnp.abs(gy) + jnp.abs(gx)

        s = sobel_abs_sum(x[0]) + sobel_abs_sum(x[1])            # [Ho, Wo]
        # Per-batch partial sum of S**2 (final mean/scale done in the wrapper).
        o_ref[...] = jnp.sum(s * s).reshape(1, 1, 1)

    return kernel


def s_loss_pallas(fpred, m, lmb: float):
    B, C, H, W = fpred.shape
    assert C >= 2, "s_loss uses channels 0 (real) and 1 (imag)"
    assert H >= 3 and W >= 3
    Ho, Wo = H - 2, W - 2

    kernel = _make_s_loss_kernel(H, W)
    partials = pl.pallas_call(
        kernel,
        out_shape=jax.ShapeDtypeStruct((B, 1, 1), jnp.float32),
        grid_spec=pltpu.PrefetchScalarGridSpec(
            num_scalar_prefetch=0,
            grid=(B,),
            in_specs=[
                pl.BlockSpec((1, 2, H, W), lambda b: (b, 0, 0, 0)),
                pl.BlockSpec((1, 2, H, W), lambda b: (b, 0, 0, 0)),
            ],
            out_specs=pl.BlockSpec((1, 1, 1), lambda b: (b, 0, 0)),
        ),
        compiler_params=pltpu.CompilerParams(
            dimension_semantics=("parallel",),
            vmem_limit_bytes=64 * 1024 * 1024,
        ),
    )(fpred, m)

    # MSE against zeros with reduction='mean' over (B, 1, Ho, Wo), scaled by lmb.
    return (lmb / (B * Ho * Wo)) * jnp.sum(partials)


def s_loss_ref(fpred, m, lmb: float):
    """Pure-JAX reference (direct 9-tap form, same semantics as PyTorch module)."""
    B, C, H, W = fpred.shape
    Ho, Wo = H - 2, W - 2
    fmask = (fpred * m).astype(jnp.float32)

    def conv3x3(x, w):
        out = jnp.zeros((B, Ho, Wo), jnp.float32)
        for dy in range(3):
            for dx in range(3):
                out = out + w[dy][dx] * x[:, dy:dy + Ho, dx:dx + Wo]
        return out

    ch0, ch1 = fmask[:, 0], fmask[:, 1]
    s = (jnp.abs(conv3x3(ch0, _SOB0)) + jnp.abs(conv3x3(ch0, _SOB1))
         + jnp.abs(conv3x3(ch1, _SOB0)) + jnp.abs(conv3x3(ch1, _SOB1)))
    return lmb * jnp.mean(s * s)


if __name__ == "__main__":
    key = jax.random.PRNGKey(0)
    k1, k2 = jax.random.split(key)

    B, C, H, W = 2, 2, 16, 16
    lmb = 0.5

    fpred = jax.random.normal(k1, (B, C, H, W), dtype=jnp.float32)
    mask = (jax.random.uniform(k2, (B, C, H, W)) > 0.5).astype(jnp.float32)

    loss = jax.block_until_ready(s_loss_pallas(fpred, mask, lmb))
    ref = jax.block_until_ready(s_loss_ref(fpred, mask, lmb))

    assert jnp.allclose(loss, ref, rtol=1e-5, atol=1e-6), (loss, ref)
    print("KERNEL_OK")
</pallas_src>

<mosaic_0001>
module attributes {stable_mosaic.version = 11 : i64} {
  func.func @kernel(%arg0: i32, %arg1: memref<1x2x16x16xf32, #tpu.memory_space<vmem>>, %arg2: memref<1x2x16x16xf32, #tpu.memory_space<vmem>>, %arg3: memref<1x1x1xf32, #tpu.memory_space<vmem>>) attributes {dimension_semantics = [#tpu.dimension_semantics<parallel>], iteration_bounds = array<i64: 2>, scalar_prefetch = 0 : i64, scratch_operands = 0 : i64, tpu.core_type = #tpu.core_type<tc>, window_params = [{transform_indices = @transform_0, window_bounds = array<i64: 1, 2, 16, 16>}, {transform_indices = @transform_1, window_bounds = array<i64: 1, 2, 16, 16>}, {transform_indices = @transform_2, window_bounds = array<i64: 1, 1, 1>}]} {
    %c0 = arith.constant 0 : index
    %c0_0 = arith.constant 0 : index
    %c0_1 = arith.constant 0 : index
    %c0_2 = arith.constant 0 : index
    %0 = vector.load %arg1[%c0, %c0_0, %c0_1, %c0_2] : memref<1x2x16x16xf32, #tpu.memory_space<vmem>>, vector<1x2x16x16xf32>
    %1 = vector.shape_cast %0 : vector<1x2x16x16xf32> to vector<2x16x16xf32>
    %c0_3 = arith.constant 0 : index
    %c0_4 = arith.constant 0 : index
    %c0_5 = arith.constant 0 : index
    %c0_6 = arith.constant 0 : index
    %2 = vector.load %arg2[%c0_3, %c0_4, %c0_5, %c0_6] : memref<1x2x16x16xf32, #tpu.memory_space<vmem>>, vector<1x2x16x16xf32>
    %3 = vector.shape_cast %2 : vector<1x2x16x16xf32> to vector<2x16x16xf32>
    %4 = arith.mulf %1, %3 : vector<2x16x16xf32>
    %5 = vector.extract_strided_slice %4 {offsets = [0, 0, 0], sizes = [1, 16, 16], strides = [1, 1, 1]} : vector<2x16x16xf32> to vector<1x16x16xf32>
    %6 = vector.shape_cast %5 : vector<1x16x16xf32> to vector<16x16xf32>
    %7 = vector.extract_strided_slice %6 {offsets = [0, 0], sizes = [16, 14], strides = [1, 1]} : vector<16x16xf32> to vector<16x14xf32>
    %8 = vector.extract_strided_slice %6 {offsets = [0, 1], sizes = [16, 14], strides = [1, 1]} : vector<16x16xf32> to vector<16x14xf32>
    %cst = arith.constant 2.000000e+00 : f32
    %9 = vector.broadcast %cst : f32 to vector<16x14xf32>
    %10 = arith.mulf %9, %8 : vector<16x14xf32>
    %11 = arith.addf %7, %10 : vector<16x14xf32>
    %12 = vector.extract_strided_slice %6 {offsets = [0, 2], sizes = [16, 14], strides = [1, 1]} : vector<16x16xf32> to vector<16x14xf32>
    %13 = arith.addf %11, %12 : vector<16x14xf32>
    %14 = vector.extract_strided_slice %13 {offsets = [0, 0], sizes = [14, 14], strides = [1, 1]} : vector<16x14xf32> to vector<14x14xf32>
    %15 = vector.extract_strided_slice %13 {offsets = [2, 0], sizes = [14, 14], strides = [1, 1]} : vector<16x14xf32> to vector<14x14xf32>
    %16 = arith.subf %14, %15 : vector<14x14xf32>
    %17 = vector.extract_strided_slice %6 {offsets = [0, 0], sizes = [14, 16], strides = [1, 1]} : vector<16x16xf32> to vector<14x16xf32>
    %18 = vector.extract_strided_slice %6 {offsets = [1, 0], sizes = [14, 16], strides = [1, 1]} : vector<16x16xf32> to vector<14x16xf32>
    %cst_7 = arith.constant 2.000000e+00 : f32
    %19 = vector.broadcast %cst_7 : f32 to vector<14x16xf32>
    %20 = arith.mulf %19, %18 : vector<14x16xf32>
    %21 = arith.addf %17, %20 : vector<14x16xf32>
    %22 = vector.extract_strided_slice %6 {offsets = [2, 0], sizes = [14, 16], strides = [1, 1]} : vector<16x16xf32> to vector<14x16xf32>
    %23 = arith.addf %21, %22 : vector<14x16xf32>
    %24 = vector.extract_strided_slice %23 {offsets = [0, 2], sizes = [14, 14], strides = [1, 1]} : vector<14x16xf32> to vector<14x14xf32>
    %25 = vector.extract_strided_slice %23 {offsets = [0, 0], sizes = [14, 14], strides = [1, 1]} : vector<14x16xf32> to vector<14x14xf32>
    %26 = arith.subf %24, %25 : vector<14x14xf32>
    %27 = math.absf %16 : vector<14x14xf32>
    %28 = math.absf %26 : vector<14x14xf32>
    %29 = arith.addf %27, %28 : vector<14x14xf32>
    %30 = vector.extract_strided_slice %4 {offsets = [1, 0, 0], sizes = [1, 16, 16], strides = [1, 1, 1]} : vector<2x16x16xf32> to vector<1x16x16xf32>
    %31 = vector.shape_cast %30 : vector<1x16x16xf32> to vector<16x16xf32>
    %32 = vector.extract_strided_slice %31 {offsets = [0, 0], sizes = [16, 14], strides = [1, 1]} : vector<16x16xf32> to vector<16x14xf32>
    %33 = vector.extract_strided_slice %31 {offsets = [0, 1], sizes = [16, 14], strides = [1, 1]} : vector<16x16xf32> to vector<16x14xf32>
    %cst_8 = arith.constant 2.000000e+00 : f32
    %34 = vector.broadcast %cst_8 : f32 to vector<16x14xf32>
    %35 = arith.mulf %34, %33 : vector<16x14xf32>
    %36 = arith.addf %32, %35 : vector<16x14xf32>
    %37 = vector.extract_strided_slice %31 {offsets = [0, 2], sizes = [16, 14], strides = [1, 1]} : vector<16x16xf32> to vector<16x14xf32>
    %38 = arith.addf %36, %37 : vector<16x14xf32>
    %39 = vector.extract_strided_slice %38 {offsets = [0, 0], sizes = [14, 14], strides = [1, 1]} : vector<16x14xf32> to vector<14x14xf32>
    %40 = vector.extract_strided_slice %38 {offsets = [2, 0], sizes = [14, 14], strides = [1, 1]} : vector<16x14xf32> to vector<14x14xf32>
    %41 = arith.subf %39, %40 : vector<14x14xf32>
    %42 = vector.extract_strided_slice %31 {offsets = [0, 0], sizes = [14, 16], strides = [1, 1]} : vector<16x16xf32> to vector<14x16xf32>
    %43 = vector.extract_strided_slice %31 {offsets = [1, 0], sizes = [14, 16], strides = [1, 1]} : vector<16x16xf32> to vector<14x16xf32>
    %cst_9 = arith.constant 2.000000e+00 : f32
    %44 = vector.broadcast %cst_9 : f32 to vector<14x16xf32>
    %45 = arith.mulf %44, %43 : vector<14x16xf32>
    %46 = arith.addf %42, %45 : vector<14x16xf32>
    %47 = vector.extract_strided_slice %31 {offsets = [2, 0], sizes = [14, 16], strides = [1, 1]} : vector<16x16xf32> to vector<14x16xf32>
    %48 = arith.addf %46, %47 : vector<14x16xf32>
    %49 = vector.extract_strided_slice %48 {offsets = [0, 2], sizes = [14, 14], strides = [1, 1]} : vector<14x16xf32> to vector<14x14xf32>
    %50 = vector.extract_strided_slice %48 {offsets = [0, 0], sizes = [14, 14], strides = [1, 1]} : vector<14x16xf32> to vector<14x14xf32>
    %51 = arith.subf %49, %50 : vector<14x14xf32>
    %52 = math.absf %41 : vector<14x14xf32>
    %53 = math.absf %51 : vector<14x14xf32>
    %54 = arith.addf %52, %53 : vector<14x14xf32>
    %55 = arith.addf %29, %54 : vector<14x14xf32>
    %56 = arith.mulf %55, %55 : vector<14x14xf32>
    %57 = vector.shape_cast %56 : vector<14x14xf32> to vector<1x14x14xf32>
    %cst_10 = arith.constant dense<0.000000e+00> : vector<1xf32>
    %58 = vector.multi_reduction <add>, %57, %cst_10 [1, 2] : vector<1x14x14xf32> to vector<1xf32>
    %59 = vector.shape_cast %58 : vector<1xf32> to vector<1x1x1xf32>
    %60 = vector.extract %59[0, 0, 0] : f32 from vector<1x1x1xf32>
    %61 = vector.broadcast %60 : f32 to vector<1x1x1xf32>
    %c0_11 = arith.constant 0 : index
    %c0_12 = arith.constant 0 : index
    %c0_13 = arith.constant 0 : index
    %62 = vector.load %arg3[%c0_11, %c0_12, %c0_13] : memref<1x1x1xf32, #tpu.memory_space<vmem>>, vector<1x1x1xf32>
    tpu.vector_store %arg3[%c0_11, %c0_12, %c0_13], %61 {strides = array<i32>} : memref<1x1x1xf32, #tpu.memory_space<vmem>>, vector<1x1x1xf32>,
    return
  }
  func.func @transform_0(%arg0: i32) -> (i32, i32, i32, i32) {
    %c0_i32 = arith.constant 0 : i32
    %c0_i32_0 = arith.constant 0 : i32
    %c0_i32_1 = arith.constant 0 : i32
    %c0_i32_2 = arith.constant 0 : i32
    return %arg0, %c0_i32, %c0_i32_0, %c0_i32_1 : i32, i32, i32, i32
  }
  func.func @transform_1(%arg0: i32) -> (i32, i32, i32, i32) {
    %c0_i32 = arith.constant 0 : i32
    %c0_i32_0 = arith.constant 0 : i32
    %c0_i32_1 = arith.constant 0 : i32
    %c0_i32_2 = arith.constant 0 : i32
    return %arg0, %c0_i32, %c0_i32_0, %c0_i32_1 : i32, i32, i32, i32
  }
  func.func @transform_2(%arg0: i32) -> (i32, i32, i32) {
    %c0_i32 = arith.constant 0 : i32
    %c0_i32_0 = arith.constant 0 : i32
    %c0_i32_1 = arith.constant 0 : i32
    return %arg0, %c0_i32, %c0_i32_0 : i32, i32, i32
  }
}

</mosaic_0001>

<bundles_post_ra>
// kernel: tpu_custom_call.1
= control target key start
LH: loop header
LB: loop body
LE: loop exit
PB: predicated region body
PF: predicated region fallthrough
CT: control target
= control target key end

     0   :  { %7 = vsyncpa [#allocation3], 0  ;;  %s960_s0 = inlined_call_operand.hbm [shape: f32[2,2,16,16], index: 0, kind: input, shape index: {}]   ;;  %s961_s1 = inlined_call_operand.hbm [shape: f32[2,2,16,16], index: 1, kind: input, shape index: {}]   ;;  %s962_s2 = inlined_call_operand.hbm [shape: f32[2,1,1], index: 2, kind: output, shape index: {}]  }
   0x1   :  { %9 = vsyncpa [#allocation3 + $0x1], 0 }
   0x2   :  { %10 = vsyncpa [#allocation6], 0 }
   0x3   :  { %12 = vsyncpa [#allocation6 + $0x1], 0 }
   0x4   :  { %13 = vsyncpa [#allocation4], 0 }
   0x5   :  { %15 = vsyncpa [#allocation4 + $0x1], 0  ;;  %s706_s9 = smov 0   ;;  %s708_s10 = smov 0  }
   0x6   :  { %s710_s11 = smov 0   ;;  %s712_s12 = smov 0  }
   0x7 LB: > { %s727_s13 = sadd.s32 4294967295, %s681_s12   ;;  %s476_s14 = sadd.s32 4294967294, %s681_s12   ;;  %s681_s12 = sphi %s712_s12, %s978_s12   ;;  %s677_s11 = sphi %s710_s11, %s977_s11   ;;  %s673_s10 = sphi %s708_s10, %s976_s10   ;;  %s669_s9 = sphi %s706_s9, %s975_s9  }
   0x8   : > { %s731_s15 = sadd.s32 1, %s681_s12   ;;  %s28_s16 = sadd.s32 1, %s677_s11 }
   0x9   : > { %s25_s17 = ssub.s32 %s681_s12, %s731_s15  ;;  %p35_p0 = scmp.ne.s32.totalorder %s677_s11, %s673_s10 }
   0xa   : > { %p26_p1 = scmp.eq.s32.totalorder %s25_s17, 0  ;;  %p36_p2 = scmp.eq.s32.totalorder %s681_s12, 0 }
   0xb   : > { %p41_p3 = scmp.ne.s32.totalorder %s673_s10, %s669_s9  ;;  %p42_p4 = scmp.eq.s32.totalorder %s727_s13, 0 }
   0xc   : > { %s743_s18 = scalar_select %p26_p1, %s677_s11, %s28_s16  }
   0xd   : > { %p745_p5 = por %p36_p2, %p35_p0  ;;  %p749_p6 = por %p42_p4, %p41_p3 }
   0xe   : > { %p91_p7 = scmp.eq.s32.totalorder %s727_s13, 1  ;;  %p97_p8 = scmp.eq.s32.totalorder %s476_s14, 1 }
   0xf   : > { %s966_s20 = scalar_select %p749_p6, 1, 0 }
  0x10   : > { %p512_p10 = scmp.lt.s32.totalorder %s681_s12, 2  ;;  %p756_p11 = por %p91_p7, %p35_p0 }
  0x11   : > { %p760_p12 = por %p97_p8, %p41_p3  ;;  %s765_s23 = sand.u32 1, %s677_s11  }
  0x12   : > { %s967_s21 = scalar_select %p756_p11, 1, 0 }
  0x13   : > { %s968_s22 = scalar_select %p760_p12, 1, 0 }
  0x14   : > { %s491_s24 = sshll.u32 %s681_s12, 9  ;;  %s479_s25 = sshll.u32 %s765_s23, 5 }
  0x15   : > { %s774_s28 = scalar_lea.hbm %s960_s0, %s491_s24  ;;  %s121_s29 = scalar_lea.vmem [#allocation2], %s479_s25 }
  0x16   : > { %s128_s30 = sshll.u32 %s121_s29, 4  ;;  %p780_p13 = pnand %p512_p10, %p745_p5  ;;  %s784_s30 = int_to_ptr.vmem [resolvable:$true] %s128_s30 }
  0x17   : > { %s118_s4 = scalar_lea.sflag [#allocation3], %s765_s23  ;;  %s551_s5 = scalar_lea.hbm %s774_s28, 512 }
  0x18   : > { %p552_p0 = scmp.ne.s32.totalorder %s774_s28, %s551_s5  ;;  %p553_p1 = pneg %p780_p13 }
  0x19   : > { %s556_s8 = scalar_lea.hbm %s960_s0, 1024  ;;  %p557_p4 = scmp.lt.u32.totalorder %s774_s28, %s960_s0 }
  0x1a   : > { %p554_p2 = pnand %p553_p1, %p552_p0  ;;  %p558_p5 = scmp.lt.u32.totalorder %s556_s8, %s551_s5 }
  0x1b   : > { %p560_p8 = scmp.lt.u32.totalorder %s551_s5, %s774_s28 }
  0x1c   : > { %p555_p3 = pneg %p554_p2  ;;  %p559_p7 = por %p558_p5, %p557_p4 }
  0x1e   : > { %p561_p10 = por %p560_p8, %p559_p7 }
  0x20   : > { %p562_p9 = pnand %p561_p10, %p555_p3 }
  0x22   : > { %565 = shalt.err (!%p562_p9)
}
  0x23   : > { %s566_s17 = scalar_lea.vmem %s784_s30, 512  ;;  %s683_s19 = smov [#allocation2]  }
  0x24   : > { %p567_p0 = scmp.ne.s32.totalorder %s784_s30, %s566_s17  ;;  %s571_s26 = sshll.u32 %s683_s19, 4  ;;  %s572_s26 = int_to_ptr.vmem [resolvable:$false] %s571_s26 }
  0x25   : > { %s573_s27 = scalar_lea.vmem %s572_s26, 1024  ;;  %p574_p11 = scmp.lt.s32.totalorder %s784_s30, %s572_s26 }
  0x26   : > { %p569_p2 = pnand %p567_p0, %p553_p1  ;;  %p575_p4 = scmp.lt.s32.totalorder %s573_s27, %s566_s17 }
  0x28   : > { %p570_p12 = pneg %p569_p2  ;;  %p576_p5 = por %p575_p4, %p574_p11 }
  0x2a   : > { %p577_p7 = pnand %p576_p5, %p570_p12 }
  0x2c   : > { %580 = shalt.err (!%p577_p7)
}
  0x2d   : > { %s684_s29 = smov 128   ;;  %s685_s5 = smov 8  }
  0x2e   : > { %504 = dma.hbm_to_vmem [thread:$0]  (!%p780_p13), %s774_s28, 512, %s784_s30, %s118_s4, %s684_s29, %s684_s29, %s685_s5  }
  0x2f   : > { %p485_p9 = scmp.ge.s32.totalorder %s681_s12, 1  ;;  %p157_p11 = scmp.lt.s32.totalorder %s681_s12, 3 }
  0x30   : > { %s828_s14 = scalar_lea.hbm %s961_s1, %s491_s24  ;;  %s142_s16 = scalar_lea.vmem [#allocation5], %s479_s25 }
  0x31   : > { %p819_p12 = pnand %p485_p9, %p157_p11  ;;  %s149_s17 = sshll.u32 %s142_s16, 4  ;;  %s832_s17 = int_to_ptr.vmem [resolvable:$true] %s149_s17 }
  0x32   : > { %s139_s28 = scalar_lea.sflag [#allocation6], %s765_s23  ;;  %s581_s30 = scalar_lea.hbm %s828_s14, 512 }
  0x33   : > { %p582_p3 = scmp.ne.s32.totalorder %s828_s14, %s581_s30  ;;  %s586_s24 = scalar_lea.hbm %s961_s1, 1024 }
  0x34   : > { %p587_p0 = scmp.lt.u32.totalorder %s828_s14, %s961_s1  ;;  %p588_p2 = scmp.lt.u32.totalorder %s586_s24, %s581_s30 }
  0x35   : > { %p584_p8 = pnand %p582_p3, %p553_p1  ;;  %p590_p5 = scmp.lt.u32.totalorder %s581_s30, %s828_s14 }
  0x36   : > { %p589_p4 = por %p588_p2, %p587_p0 }
  0x37   : > { %p585_p10 = pneg %p584_p8 }
  0x38   : > { %p591_p7 = por %p590_p5, %p589_p4 }
  0x3a   : > { %p592_p9 = pnand %p591_p7, %p585_p10 }
  0x3c   : > { %595 = shalt.err (!%p592_p9)
}
  0x3d   : > { %s596_s25 = scalar_lea.vmem %s832_s17, 512  ;;  %s686_s7 = smov [#allocation5]  }
  0x3e   : > { %p597_p11 = scmp.ne.s32.totalorder %s832_s17, %s596_s25  ;;  %s601_s8 = sshll.u32 %s686_s7, 4  ;;  %s602_s8 = int_to_ptr.vmem [resolvable:$false] %s601_s8 }
  0x3f   : > { %s603_s16 = scalar_lea.vmem %s602_s8, 1024  ;;  %p604_p6 = scmp.lt.s32.totalorder %s832_s17, %s602_s8 }
  0x40   : > { %p599_p3 = pnand %p597_p11, %p553_p1  ;;  %p605_p0 = scmp.lt.s32.totalorder %s603_s16, %s596_s25 }
  0x42   : > { %p600_p8 = pneg %p599_p3  ;;  %p606_p2 = por %p605_p0, %p604_p6 }
  0x44   : > { %p607_p4 = pnand %p606_p2, %p600_p8 }
  0x46   : > { %610 = shalt.err (!%p607_p4)
}
  0x47   : > { %507 = dma.hbm_to_vmem [thread:$0]  (!%p780_p13), %s828_s14, 512, %s832_s17, %s139_s28, %s684_s29, %s684_s29, %s685_s5  }
  0x48   : > { %161 = sbr.rel (%p819_p12) target bundleno = 565 (0x235), region = 28  ;;  %s866_s30 = sand.u32 (!%p819_p12), 1, %s673_s10  }
  0x49   : > { %s486_s4 = sshll.u32 (!%p819_p12), %s866_s30, 5  ;;  %s164_s19 = scalar_lea.sflag (!%p819_p12), [#allocation3], %s866_s30 }
  0x4a   : > { %s167_s3 = scalar_lea.vmem (!%p819_p12), [#allocation2], %s486_s4  ;;  %p971_p6 = scmp.ne.s32.totalorder (!%p819_p12), %s966_s20, 0 }
  0x4f   : > { %656 = dma.done.wait (%p971_p6), %s164_s19, 512  }
  0x50   : > { %658 = vsyncadd (%p971_p6), %s164_s19, 4294966784  ;;  %s173_s23 = scalar_lea.sflag [#allocation6], %s866_s30  ;;  %s176_s29 = scalar_lea.vmem [#allocation5], %s486_s4 }
  0x51   : > { %660 = dma.done.wait (%p971_p6), %s173_s23, 512  }
  0x52   : > { %662 = vsyncadd (%p971_p6), %s173_s23, 4294966784  ;;  %v201_v0 = vld [vmem:[%s167_s3] sm:$0xff]  ;;  %v202_v1 = vld [vmem:[%s167_s3 + $0x8] sm:$0xff]  ;;  %vm237_vm0 = vcmask 1045504   ;;  %vm245_vm1 = vcmask 1046528   ;;  %s687_s20 = smov 2  }
  0x53   : > { %v205_v2 = vld [vmem:[%s176_s29] sm:$0xff]  ;;  %v206_v3 = vld [vmem:[%s176_s29 + $0x8] sm:$0xff]  ;;  %v203_v5 = vld [vmem:[%s167_s3 + $0x10] sm:$0xff]  ;;  %s688_s5 = smov 127   ;;  %s689_s6 = smov 126   ;;  %vm357_vm2 = vcmask 113664  }
  0x54   : > { %v879_v4 = vmul.f32 %v205_v2, %v201_v0  ;;  %v204_v6 = vld [vmem:[%s167_s3 + $0x18] sm:$0xff]  ;;  %v881_v7 = vmul.f32 %v206_v3, %v202_v1  ;;  %v207_v8 = vld [vmem:[%s176_s29 + $0x10] sm:$0xff]  ;;  %vm359_vm3 = vcmask 111616   ;;  %s488_s14 = sshll.u32 %s727_s13, 4  ;;  %s200_s17 = scalar_lea.vmem [#allocation7], %s866_s30  ;;  %vm372_vm4 = vcmask 0  }
  0x55   : > { %v208_v9 = vld [vmem:[%s176_s29 + $0x18] sm:$0xff]  ;;  %v884_v11 = vmul.f32 %v207_v8, %v203_v5  ;;  %s387_s28 = sshll.u32 %s200_s17, 4  ;;  %s916_s27 = scalar_lea.hbm %s962_s2, %s488_s14  ;;  %s918_s28 = int_to_ptr.vmem [resolvable:$true] %s387_s28 }
  0x56   : > { %v213_v10 = vmul.f32 2.0, %v879_v4  ;;  %v886_v12 = vmul.f32 %v208_v9, %v204_v6  ;;  %v214_v13 = vmul.f32 2.0, %v881_v7  ;;  %v253_v14 = vrot.slane %v879_v4, 2  ;;  %s375_s7 = scalar_lea.sflag [#allocation4], %s866_s30  ;;  %s611_s8 = scalar_lea.vmem %s918_s28, 16 }
  0x57   : > { %v254_v15 = vrot.slane %v881_v7, 2  ;;  %v284_v17 = vmul.f32 2.0, %v884_v11  ;;  %v322_v19 = vrot.slane %v884_v11, 2  ;;  %p612_p13 = scmp.ne.s32.totalorder %s918_s28, %s611_s8  ;;  %p972_p1 = scmp.ne.s32.totalorder %s967_s21, 0 }
  0x58   : > { %v246_v16 = vrot.slane %v213_v10, 1  ;;  %v285_v18 = vmul.f32 2.0, %v886_v12  ;;  %v247_v20 = vrot.slane %v214_v13, 1  ;;  %v323_v21 = vrot.slane %v886_v12, 2  ;;  %s690_s13 = smov [#allocation7]  }
  0x59   : > { %v315_v22 = vrot.slane %v284_v17, 1  ;;  %v255_v25 = vsel %vm237_vm0, %v253_v14, %v254_v15  ;;  %p613_p12 = pnand %p612_p13, %p972_p1  ;;  %s615_s16 = sshll.u32 %s690_s13, 4  ;;  %s616_s16 = int_to_ptr.vmem [resolvable:$false] %s615_s16 }
  0x5a   : > { %v316_v23 = vrot.slane %v285_v18, 1  ;;  %v248_v24 = vsel %vm245_vm1, %v246_v16, %v247_v20  ;;  %v324_v28 = vsel %vm237_vm0, %v322_v19, %v323_v21  ;;  %v252_v29 = vadd.f32 %v247_v20, %v881_v7  ;;  %s617_s4 = scalar_lea.vmem %s616_s16, 32  ;;  %p618_p5 = scmp.lt.s32.totalorder %s918_s28, %s616_s16 }
  0x5b   : > { %v251_v26 = vadd.f32 %v248_v24, %v879_v4  ;;  %p614_p10 = pneg %p613_p12  ;;  %p619_p7 = scmp.lt.s32.totalorder %s617_s4, %s611_s8 }
  0x5c   : > { %v317_v27 = vsel %vm245_vm1, %v315_v22, %v316_v23  ;;  %v321_v31 = vadd.f32 %v316_v23, %v886_v12  ;;  %v259_v34 = vadd.f32 %v254_v15, %v252_v29 }
  0x5d   : > { %v320_v30 = vadd.f32 %v317_v27, %v884_v11  ;;  %v258_v32 = vadd.f32 %v255_v25, %v251_v26  ;;  %p620_p9 = por %p619_p7, %p618_p5 }
  0x5e   : > { %v328_v35 = vadd.f32 %v323_v21, %v321_v31 }
  0x5f   : > { %v327_v33 = vadd.f32 %v324_v28, %v320_v30  ;;  %262 = vrot.lane.b32.xlu0 %v258_v32, %s687_s20  ;;  %p621_p11 = pnand %p620_p9, %p614_p10 }
  0x61   : > { %331 = vrot.lane.b32.xlu1 %v327_v33, %s687_s20 }
  0x63   : > { %264 = vrot.lane.b32.xlu0 %v259_v34, %s687_s20 }
  0x65   : > { %333 = vrot.lane.b32.xlu1 %v328_v35, %s687_s20 }
  0x67   : > { %217 = vrot.lane.b32.xlu0 %v213_v10, %s688_s5 }
  0x69   : > { %219 = vrot.lane.b32.xlu1 %v214_v13, %s688_s5 }
  0x6b   : > { %288 = vrot.lane.b32.xlu0 %v284_v17, %s688_s5 }
  0x6d   : > { %290 = vrot.lane.b32.xlu1 %v285_v18, %s688_s5 }
  0x6f   : > { %227 = vrot.lane.b32.xlu0 %v879_v4, %s689_s6 }
  0x71   : > { %229 = vrot.lane.b32.xlu1 %v881_v7, %s689_s6 }
  0x73   : > { %298 = vrot.lane.b32.xlu0 %v884_v11, %s689_s6 }
  0x75   : > { %300 = vrot.lane.b32.xlu1 %v886_v12, %s689_s6 }
  0xd1   : > { %v263_v36 = vpop.permute.xlu0 %262 }
  0xd2   : > { %v268_v37 = vsub.f32 %v258_v32, %v263_v36 }
  0xd3   : > { %v332_v38 = vpop.permute.xlu1 %331 }
  0xd4   : > { %v337_v39 = vsub.f32 %v327_v33, %v332_v38  ;;  %v272_v40 = vand.u32 2147483647, %v268_v37 }
  0xd5   : > { %v265_v41 = vpop.permute.xlu0 %264 }
  0xd6   : > { %v341_v42 = vand.u32 2147483647, %v337_v39  ;;  %v269_v43 = vsub.f32 %v259_v34, %v265_v41  ;;  %276 = vrot.lane.b32.xlu0 %v272_v40, %s689_s6 }
  0xd7   : > { %v334_v44 = vpop.permute.xlu1 %333 }
  0xd8   : > { %v338_v45 = vsub.f32 %v328_v35, %v334_v44  ;;  %v273_v46 = vand.u32 2147483647, %v269_v43 }
  0xd9   : > { %v218_v49 = vpop.permute.xlu0 %217 }
  0xda   : > { %v342_v47 = vand.u32 2147483647, %v338_v45  ;;  %345 = vrot.lane.b32.xlu0 %v341_v42, %s689_s6  ;;  %278 = vrot.lane.b32.xlu1 %v273_v46, %s689_s6  ;;  %v223_v55 = vadd.f32 %v218_v49, %v879_v4 }
  0xdb   : > { %v220_v48 = vpop.permute.xlu1 %219 }
  0xdc   : > { %v224_v54 = vadd.f32 %v220_v48, %v881_v7 }
  0xdd   : > { %v289_v51 = vpop.permute.xlu0 %288 }
  0xde   : > { %347 = vrot.lane.b32.xlu1 %v342_v47, %s689_s6  ;;  %v294_v57 = vadd.f32 %v289_v51, %v884_v11 }
  0xdf   : > { %v291_v50 = vpop.permute.xlu1 %290 }
  0xe0   : > { %v295_v56 = vadd.f32 %v291_v50, %v886_v12 }
  0xe1   : > { %v228_v53 = vpop.permute.xlu0 %227 }
  0xe2   : > { %v233_v61 = vadd.f32 %v228_v53, %v223_v55 }
  0xe3   : > { %v230_v52 = vpop.permute.xlu1 %229 }
  0xe4   : > { %v234_v60 = vadd.f32 %v230_v52, %v224_v54  ;;  %v238_v1 = vrot.slane %v233_v61, 2 }
  0xe5   : > { %v299_v59 = vpop.permute.xlu0 %298 }
  0xe6   : > { %v304_v63 = vadd.f32 %v299_v59, %v294_v57  ;;  %v239_v0 = vrot.slane %v234_v60, 2 }
  0xe7   : > { %v301_v58 = vpop.permute.xlu1 %300 }
  0xe8   : > { %v305_v62 = vadd.f32 %v301_v58, %v295_v56  ;;  %v308_v3 = vrot.slane %v304_v63, 2  ;;  %v240_v5 = vsel %vm237_vm0, %v238_v1, %v239_v0  ;;  %v244_v9 = vsub.f32 %v234_v60, %v239_v0 }
  0xe9   : > { %v243_v7 = vsub.f32 %v233_v61, %v240_v5 }
  0xea   : > { %v309_v2 = vrot.slane %v305_v62, 2  ;;  %v271_v17 = vand.u32 2147483647, %v244_v9 }
  0xeb   : > { %v270_v11 = vand.u32 2147483647, %v243_v7 }
  0xec   : > { %v310_v6 = vsel %vm237_vm0, %v308_v3, %v309_v2  ;;  %v314_v10 = vsub.f32 %v305_v62, %v309_v2 }
  0xed   : > { %v313_v4 = vsub.f32 %v304_v63, %v310_v6 }
  0xee   : > { %v340_v19 = vand.u32 2147483647, %v314_v10 }
  0xef   : > { %v339_v12 = vand.u32 2147483647, %v313_v4 }
 0x148   : > { %v277_v8 = vpop.permute.xlu0 %276 }
 0x149   : > { %v282_v15 = vadd.f32 %v277_v8, %v270_v11 }
 0x14c   : > { %v279_v13 = vpop.permute.xlu1 %278  ;;  %v346_v14 = vpop.permute.xlu0 %345 }
 0x14d   : > { %v351_v16 = vadd.f32 %v346_v14, %v339_v12  ;;  %v283_v21 = vadd.f32 %v279_v13, %v271_v17 }
 0x14f   : > { %v353_v18 = vadd.f32 %v351_v16, %v282_v15 }
 0x150   : > { %v348_v20 = vpop.permute.xlu1 %347 }
 0x151   : > { %v352_v22 = vadd.f32 %v348_v20, %v340_v19  ;;  %v355_v23 = vmul.f32 %v353_v18, %v353_v18 }
 0x153   : > { %v354_v24 = vadd.f32 %v352_v22, %v283_v21  ;;  %v358_v26 = vsel %vm357_vm2, %v355_v23, 0.0 }
 0x155   : > { %v356_v25 = vmul.f32 %v354_v24, %v354_v24 }
 0x157   : > { %v360_v27 = vsel %vm359_vm3, %v356_v25, 0.0 }
 0x158   : > { %v361_v28 = vadd.f32 %v360_v27, %v358_v26 }
 0x15a   : > { %362 = vadd.xlane.f32.xlu0 %v361_v28 }
 0x1e7   : > { %v363_v29 = vpop.xlane.xlu0 %362 }
 0x1e8   : > { %v364_v30 = vrot.slane %v363_v29, 4 }
 0x1ea   : > { %v365_v31 = vadd.f32 %v364_v30, %v363_v29 }
 0x1ec   : > { %v366_v32 = vrot.slane %v365_v31, 2 }
 0x1ee   : > { %v367_v33 = vadd.f32 %v366_v32, %v365_v31 }
 0x1f0   : > { %v368_v34 = vrot.slane %v367_v33, 1 }
 0x1f2   : > { %v369_v35 = vadd.f32 %v368_v34, %v367_v33 }
 0x1f4   : > { %493 = vpush %v369_v35 }
 0x225   : > { %s494_s25 = spop %493 }
 0x226   : > { %v371_v36 = vstv %s494_s25 }
 0x227   : > { %373 = vst.msk [vmem:[%s200_s17] sm:$0x1] %vm372_vm4, %v371_v36 }
 0x228   : > { %624 = shalt.err (!%p621_p11)
}
 0x229   : > { %s625_s30 = scalar_lea.hbm %s916_s27, 16  ;;  %s629_s23 = scalar_lea.hbm %s962_s2, 32 }
 0x22a   : > { %p626_p3 = scmp.ne.s32.totalorder %s916_s27, %s625_s30  ;;  %p630_p2 = scmp.lt.u32.totalorder %s916_s27, %s962_s2 }
 0x22b   : > { %p631_p4 = scmp.lt.u32.totalorder %s629_s23, %s625_s30  ;;  %p633_p13 = scmp.lt.u32.totalorder %s625_s30, %s916_s27 }
 0x22c   : > { %p627_p8 = pnand %p626_p3, %p972_p1 }
 0x22d   : > { %p632_p6 = por %p631_p4, %p630_p2 }
 0x22e   : > { %p628_p0 = pneg %p627_p8 }
 0x22f   : > { %p634_p12 = por %p633_p13, %p632_p6 }
 0x231   : > { %p635_p10 = pnand %p634_p12, %p628_p0 }
 0x233   : > { %638 = shalt.err (!%p635_p10)
}
 0x234   : > { %499 = dma.vmem_to_hbm [thread:$0]  (%p972_p1), %s918_s28, 16, %s916_s27, %s375_s7  }
 0x235 PF: > { %s399_s5 = sand.u32 1, %s669_s9   ;;  %p973_p5 = scmp.ne.s32.totalorder %s968_s22, 0 }
 0x236   : > { %p974_p7 = scmp.ge.s32.totalorder %s681_s12, 2  ;;  %s400_s6 = scalar_lea.sflag [#allocation4], %s399_s5 }
 0x238   : > { %p509_p9 = pnand %p974_p7, %p973_p5 }
 0x23a   : > { %664 = dma.done.wait (!%p509_p9), %s400_s6, 16  }
 0x23b   : > { %666 = vsyncadd (!%p509_p9), %s400_s6, 4294967280  ;;  %p18_p11 = scmp.ge.s32.totalorder %s731_s15, 4   ;;  %s975_s9 = smov %s673_s10 }
 0x23c   : > { %s976_s10 = smov %s677_s11  ;;  %s977_s11 = smov %s743_s18 }
 0x23d   : > { %s978_s12 = smov %s731_s15  ;;  %20 = sbr.rel (!%p18_p11) target bundleno = 7 (0x7), region = 86 }
 0x244   :  { %404 = vsyncpa [#allocation3], 1 }
 0x245   :  { %406 = vsyncpa [#allocation3 + $0x1], 1 }
 0x246   :  { %407 = vsyncpa [#allocation6], 1 }
 0x247   :  { %409 = vsyncpa [#allocation6 + $0x1], 1 }
 0x248   :  { %410 = vsyncpa [#allocation4], 1 }
 0x249   :  { %412 = vsyncpa [#allocation4 + $0x1], 1 }

</bundles_post_ra>
